<compile_context>
chip_gen: v6e
topology: v6e:2x2x1
jax: 0.10.0
libtpu: 0.0.40
codegen_flags: <defaults>
</compile_context>

<pallas_src>
import functools

import jax
import jax.numpy as jnp
from jax.experimental import pallas as pl
from jax.experimental.pallas import tpu as pltpu


def _attention_kernel(x_ref, wq_ref, bq_ref, wk_ref, bk_ref, wv_ref, bv_ref,
                      hm_ref, hmt_ref, w1_ref, b1_ref, o_ref, *, heads):
    bt, n, c = x_ref.shape          # (batch tile, seq, channels)
    hc = wk_ref.shape[1]            # heads * c
    m = bt * n                      # rows fed to the MXU
    cdt = wk_ref.dtype              # matmul operand dtype (f32, or bf16 on v6e/v7x)

    x3 = x_ref[...]                                     # (bt, n, c)
    x2d = x3.reshape(m, c).astype(cdt)                  # (m, c)

    # K/V projections: one lane-dense matmul each (block-diagonal weights),
    # f32 accumulation on the MXU.  Result is head-major along the last dim.
    k = jnp.dot(x2d, wk_ref[...], preferred_element_type=jnp.float32) + bk_ref[...]   # (m, hc)
    v = jnp.dot(x2d, wv_ref[...], preferred_element_type=jnp.float32) + bv_ref[...]   # (m, hc)

    # Queries: only the first token of each batch row.  scale is pre-folded
    # into wq/bq by the wrapper.
    xq = x3[:, 0, :].astype(cdt)                        # (bt, c)
    q = jnp.dot(xq, wq_ref[...], preferred_element_type=jnp.float32) + bq_ref[...]    # (bt, hc)

    # Scores dots[b, j, a] = <q[b, head a], k[b, j, head a]>.
    # Head-segmented reduction done on the MXU via the 0/1 (hc, heads) matrix.
    kq = (k.reshape(bt, n, hc) * q[:, None, :]).reshape(m, hc)                          # (m, hc)
    dots = jnp.dot(kq, hm_ref[...], preferred_element_type=jnp.float32)                 # (m, heads)
    dots3 = dots.reshape(bt, n, heads)                                                  # (bt, n, heads)

    # Numerically-stable softmax over the key axis (axis=1); reciprocal on EUP.
    mx = jnp.max(dots3, axis=1, keepdims=True)
    e = jnp.exp(dots3 - mx)
    attn = e * pl.reciprocal(jnp.sum(e, axis=1, keepdims=True), approx=True)            # (bt, n, heads)

    # out[b, head a, :] = sum_j attn[b, j, a] * v[b, j, head a, :]
    # Expand attn to head segments with the transposed 0/1 matrix (MXU), weight
    # V elementwise (VPU), reduce over the token axis.
    attn_exp = jnp.dot(attn.reshape(m, heads), hmt_ref[...],
                       preferred_element_type=jnp.float32)                              # (m, hc)
    ctx = jnp.sum((attn_exp * v).reshape(bt, n, hc), axis=1)                            # (bt, hc)

    # nn1: (h*c) -> c.  Dropout (do1) is identity at inference.
    y = jnp.dot(ctx.astype(cdt), w1_ref[...],
                preferred_element_type=jnp.float32) + b1_ref[...]                       # (bt, c)
    o_ref[...] = y.astype(o_ref.dtype)


def _block_diag(w, heads):
    """(ch, c) per-head weight -> (heads*ch, heads*c) block-diagonal weight."""
    ch, c = w.shape
    eye = jnp.eye(heads, dtype=w.dtype)
    return jnp.einsum("ab,ij->aibj", eye, w).reshape(heads * ch, heads * c)


def _pick_block_batch(batch, seq, target_rows=256):
    """Largest divisor of `batch` so that bt*seq ~ target_rows (MXU-sized M)."""
    want = max(1, target_rows // max(seq, 1))
    bt = 1
    for d in range(1, batch + 1):
        if batch % d == 0 and d <= want:
            bt = d
    # Keep >= 2 grid steps when the batch is big enough (v7x has 2 TensorCores).
    if bt == batch and batch >= 16 and batch % 2 == 0:
        bt = batch // 2
    return bt


def attention_pallas(x, params, *, heads, mask=None,
                     matmul_dtype=jnp.float32, block_batch=None):
    """x: (B, N, C) float32.  params: dict of (in_features, out_features) weights.

    matmul_dtype: set to jnp.bfloat16 on v6e/v7x for ~2x MXU throughput
    (accumulation stays f32); default f32 keeps bit-accurate-ish results.
    """
    if mask is not None:
        # TODO(synk): optional mask path (F.pad + masked_fill) not implemented.
        raise NotImplementedError("only the mask=None path is supported")
    B, N, C = x.shape
    assert C % heads == 0 and N >= 1
    scale = float(C) ** -0.5
    HC = heads * C

    # One-time parameter prep (plain XLA, outside the kernel): lane-dense,
    # head-major weights; scale folded into the query projection.
    wq_bd = (_block_diag(params["wq"], heads) * scale).astype(matmul_dtype)   # (C, HC)
    bq_t = jnp.tile(params["bq"], (1, heads)) * scale                         # (1, HC)
    wk_bd = _block_diag(params["wk"], heads).astype(matmul_dtype)             # (C, HC)
    bk_t = jnp.tile(params["bk"], (1, heads))                                 # (1, HC)
    wv_bd = _block_diag(params["wv"], heads).astype(matmul_dtype)             # (C, HC)
    bv_t = jnp.tile(params["bv"], (1, heads))                                 # (1, HC)
    w1 = params["w1"].astype(matmul_dtype)                                    # (HC, C)
    b1 = params["b1"]                                                         # (1, C)
    # 0/1 head-segment matrix: hm[e, a] = 1 iff e // C == a (kept f32 for exact scores).
    hm = jnp.repeat(jnp.eye(heads, dtype=jnp.float32), C, axis=0)             # (HC, heads)
    hmt = hm.T                                                                # (heads, HC)

    bt = _pick_block_batch(B, N) if block_batch is None else block_batch
    assert B % bt == 0
    grid = (B // bt,)

    kernel = functools.partial(_attention_kernel, heads=heads)
    # Weights/masks use a constant index_map -> they stay resident in VMEM.
    resident = lambda a: pl.BlockSpec(a.shape, lambda i: tuple(0 for _ in a.shape))

    out2d = pl.pallas_call(
        kernel,
        out_shape=jax.ShapeDtypeStruct((B, C), x.dtype),
        grid_spec=pltpu.PrefetchScalarGridSpec(
            num_scalar_prefetch=0,
            grid=grid,
            in_specs=[
                pl.BlockSpec((bt, N, C), lambda i: (i, 0, 0)),
                resident(wq_bd), resident(bq_t),
                resident(wk_bd), resident(bk_t),
                resident(wv_bd), resident(bv_t),
                resident(hm), resident(hmt),
                resident(w1), resident(b1),
            ],
            out_specs=pl.BlockSpec((bt, C), lambda i: (i, 0)),
        ),
        compiler_params=pltpu.CompilerParams(
            dimension_semantics=("parallel",),
            vmem_limit_bytes=48 * 1024 * 1024),
    )(x, wq_bd, bq_t, wk_bd, bk_t, wv_bd, bv_t, hm, hmt, w1, b1)

    # Dense (B, C) store in-kernel; restore the module's (B, 1, C) shape here.
    return out2d.reshape(B, 1, C)


def _init_linear(key, in_f, out_f):
    """Deterministic init mimicking nn.Linear's uniform(-1/sqrt(in), 1/sqrt(in)).
    Weight returned already transposed to (in_f, out_f)."""
    kw, kb = jax.random.split(key)
    bound = 1.0 / (in_f ** 0.5)
    w = jax.random.uniform(kw, (in_f, out_f), jnp.float32, -bound, bound)
    b = jax.random.uniform(kb, (1, out_f), jnp.float32, -bound, bound)
    return w, b


def attention_reference(x, params, *, heads):
    """Pure-JAX reference mirroring the PyTorch forward (mask=None, eval mode)."""
    B, N, C = x.shape
    h = heads
    ch = C // h
    scale = float(C) ** -0.5

    q = jnp.einsum("bqhc,cd->bhqd", x[:, 0:1].reshape(B, 1, h, ch), params["wq"]) + params["bq"]
    k = jnp.einsum("bnhc,cd->bhnd", x.reshape(B, N, h, ch), params["wk"]) + params["bk"]
    v = jnp.einsum("bnhc,cd->bhnd", x.reshape(B, N, h, ch), params["wv"]) + params["bv"]
    dots = jnp.einsum("bhid,bhjd->bhij", q, k) * scale
    attn = jax.nn.softmax(dots, axis=-1)
    out = jnp.einsum("bhij,bhjd->bhid", attn, v)           # (B, h, 1, C)
    out = jnp.transpose(out, (0, 2, 1, 3)).reshape(B, 1, h * C)
    return jnp.einsum("bnf,fc->bnc", out, params["w1"]) + params["b1"]


if __name__ == "__main__":
    B, N, DIM, HEADS = 2, 8, 32, 8

    root = jax.random.PRNGKey(0)
    kx, kq, kk, kv, k1 = jax.random.split(root, 5)

    x = jax.random.normal(kx, (B, N, DIM), jnp.float32)

    params = {}
    params["wq"], params["bq"] = _init_linear(kq, DIM // HEADS, DIM)
    params["wk"], params["bk"] = _init_linear(kk, DIM // HEADS, DIM)
    params["wv"], params["bv"] = _init_linear(kv, DIM // HEADS, DIM)
    params["w1"], params["b1"] = _init_linear(k1, DIM * HEADS, DIM)
    # NOTE: to_qkv is declared in __init__ but never used in forward -> omitted.

    out = jax.block_until_ready(attention_pallas(x, params, heads=HEADS))

    ref = attention_reference(x, params, heads=HEADS)
    assert out.shape == (B, 1, DIM)
    # approx=True softmax reciprocal -> slightly looser tolerance than exact f32.
    assert jnp.allclose(out, ref, atol=2e-3, rtol=2e-3), "mismatch vs reference"

    print("KERNEL_OK")
</pallas_src>

<mosaic_0001>
module attributes {stable_mosaic.version = 11 : i64} {
  func.func @_attention_kernel(%arg0: i32, %arg1: memref<2x8x32xf32, #tpu.memory_space<vmem>>, %arg2: memref<32x256xf32, #tpu.memory_space<vmem>>, %arg3: memref<1x256xf32, #tpu.memory_space<vmem>>, %arg4: memref<32x256xf32, #tpu.memory_space<vmem>>, %arg5: memref<1x256xf32, #tpu.memory_space<vmem>>, %arg6: memref<32x256xf32, #tpu.memory_space<vmem>>, %arg7: memref<1x256xf32, #tpu.memory_space<vmem>>, %arg8: memref<256x8xf32, #tpu.memory_space<vmem>>, %arg9: memref<8x256xf32, #tpu.memory_space<vmem>>, %arg10: memref<256x32xf32, #tpu.memory_space<vmem>>, %arg11: memref<1x32xf32, #tpu.memory_space<vmem>>, %arg12: memref<2x32xf32, #tpu.memory_space<vmem>>) attributes {dimension_semantics = [#tpu.dimension_semantics<parallel>], iteration_bounds = array<i64: 1>, scalar_prefetch = 0 : i64, scratch_operands = 0 : i64, tpu.core_type = #tpu.core_type<tc>, window_params = [{transform_indices = @transform_0, window_bounds = array<i64: 2, 8, 32>}, {pipeline_mode = #tpu.pipeline_mode<synchronous>, transform_indices = @transform_1, window_bounds = array<i64: 32, 256>}, {pipeline_mode = #tpu.pipeline_mode<synchronous>, transform_indices = @transform_2, window_bounds = array<i64: 1, 256>}, {pipeline_mode = #tpu.pipeline_mode<synchronous>, transform_indices = @transform_3, window_bounds = array<i64: 32, 256>}, {pipeline_mode = #tpu.pipeline_mode<synchronous>, transform_indices = @transform_4, window_bounds = array<i64: 1, 256>}, {pipeline_mode = #tpu.pipeline_mode<synchronous>, transform_indices = @transform_5, window_bounds = array<i64: 32, 256>}, {pipeline_mode = #tpu.pipeline_mode<synchronous>, transform_indices = @transform_6, window_bounds = array<i64: 1, 256>}, {pipeline_mode = #tpu.pipeline_mode<synchronous>, transform_indices = @transform_7, window_bounds = array<i64: 256, 8>}, {pipeline_mode = #tpu.pipeline_mode<synchronous>, transform_indices = @transform_8, window_bounds = array<i64: 8, 256>}, {pipeline_mode = #tpu.pipeline_mode<synchronous>, transform_indices = @transform_9, window_bounds = array<i64: 256, 32>}, {pipeline_mode = #tpu.pipeline_mode<synchronous>, transform_indices = @transform_10, window_bounds = array<i64: 1, 32>}, {transform_indices = @transform_11, window_bounds = array<i64: 2, 32>}]} {
    %c0 = arith.constant 0 : index
    %c0_0 = arith.constant 0 : index
    %c0_1 = arith.constant 0 : index
    %0 = vector.load %arg1[%c0, %c0_0, %c0_1] : memref<2x8x32xf32, #tpu.memory_space<vmem>>, vector<2x8x32xf32>
    %1 = vector.shape_cast %0 : vector<2x8x32xf32> to vector<16x32xf32>
    %c0_2 = arith.constant 0 : index
    %c0_3 = arith.constant 0 : index
    %2 = vector.load %arg4[%c0_2, %c0_3] : memref<32x256xf32, #tpu.memory_space<vmem>>, vector<32x256xf32>
    %cst = arith.constant dense<0.000000e+00> : vector<16x256xf32>
    %3 = tpu.matmul %1, %2, %cst {dimension_numbers = #tpu.dot_dimension_numbers<[1], [0], [0], [1], [0, 0, 1, 1], [], []>} : vector<16x32xf32>, vector<32x256xf32>, vector<16x256xf32> -> vector<16x256xf32>
    %c0_4 = arith.constant 0 : index
    %c0_5 = arith.constant 0 : index
    %4 = vector.load %arg5[%c0_4, %c0_5] : memref<1x256xf32, #tpu.memory_space<vmem>>, vector<1x256xf32>
    %5 = vector.broadcast %4 : vector<1x256xf32> to vector<16x256xf32>
    %6 = arith.addf %3, %5 : vector<16x256xf32>
    %c0_6 = arith.constant 0 : index
    %c0_7 = arith.constant 0 : index
    %7 = vector.load %arg6[%c0_6, %c0_7] : memref<32x256xf32, #tpu.memory_space<vmem>>, vector<32x256xf32>
    %cst_8 = arith.constant dense<0.000000e+00> : vector<16x256xf32>
    %8 = tpu.matmul %1, %7, %cst_8 {dimension_numbers = #tpu.dot_dimension_numbers<[1], [0], [0], [1], [0, 0, 1, 1], [], []>} : vector<16x32xf32>, vector<32x256xf32>, vector<16x256xf32> -> vector<16x256xf32>
    %c0_9 = arith.constant 0 : index
    %c0_10 = arith.constant 0 : index
    %9 = vector.load %arg7[%c0_9, %c0_10] : memref<1x256xf32, #tpu.memory_space<vmem>>, vector<1x256xf32>
    %10 = vector.broadcast %9 : vector<1x256xf32> to vector<16x256xf32>
    %11 = arith.addf %8, %10 : vector<16x256xf32>
    %12 = vector.extract_strided_slice %0 {offsets = [0, 0, 0], sizes = [2, 1, 32], strides = [1, 1, 1]} : vector<2x8x32xf32> to vector<2x1x32xf32>
    %13 = vector.shape_cast %12 : vector<2x1x32xf32> to vector<2x32xf32>
    %c0_11 = arith.constant 0 : index
    %c0_12 = arith.constant 0 : index
    %14 = vector.load %arg2[%c0_11, %c0_12] : memref<32x256xf32, #tpu.memory_space<vmem>>, vector<32x256xf32>
    %cst_13 = arith.constant dense<0.000000e+00> : vector<2x256xf32>
    %15 = tpu.matmul %13, %14, %cst_13 {dimension_numbers = #tpu.dot_dimension_numbers<[1], [0], [0], [1], [0, 0, 1, 1], [], []>} : vector<2x32xf32>, vector<32x256xf32>, vector<2x256xf32> -> vector<2x256xf32>
    %c0_14 = arith.constant 0 : index
    %c0_15 = arith.constant 0 : index
    %16 = vector.load %arg3[%c0_14, %c0_15] : memref<1x256xf32, #tpu.memory_space<vmem>>, vector<1x256xf32>
    %17 = vector.broadcast %16 : vector<1x256xf32> to vector<2x256xf32>
    %18 = arith.addf %15, %17 : vector<2x256xf32>
    %19 = vector.shape_cast %6 : vector<16x256xf32> to vector<2x8x256xf32>
    %20 = vector.shape_cast %18 : vector<2x256xf32> to vector<2x1x256xf32>
    %21 = vector.broadcast %20 : vector<2x1x256xf32> to vector<2x8x256xf32>
    %22 = arith.mulf %19, %21 : vector<2x8x256xf32>
    %23 = vector.shape_cast %22 : vector<2x8x256xf32> to vector<16x256xf32>
    %c0_16 = arith.constant 0 : index
    %c0_17 = arith.constant 0 : index
    %24 = vector.load %arg8[%c0_16, %c0_17] : memref<256x8xf32, #tpu.memory_space<vmem>>, vector<256x8xf32>
    %cst_18 = arith.constant dense<0.000000e+00> : vector<16x8xf32>
    %25 = tpu.matmul %23, %24, %cst_18 {dimension_numbers = #tpu.dot_dimension_numbers<[1], [0], [0], [1], [0, 0, 1, 1], [], []>} : vector<16x256xf32>, vector<256x8xf32>, vector<16x8xf32> -> vector<16x8xf32>
    %26 = vector.shape_cast %25 : vector<16x8xf32> to vector<2x8x8xf32>
    %cst_19 = arith.constant dense<0xFF800000> : vector<2x8xf32>
    %27 = vector.multi_reduction <maximumf>, %26, %cst_19 [1] : vector<2x8x8xf32> to vector<2x8xf32>
    %28 = vector.shape_cast %27 : vector<2x8xf32> to vector<2x1x8xf32>
    %29 = vector.broadcast %28 : vector<2x1x8xf32> to vector<2x8x8xf32>
    %30 = arith.subf %26, %29 : vector<2x8x8xf32>
    %31 = math.exp %30 : vector<2x8x8xf32>
    %cst_20 = arith.constant dense<0.000000e+00> : vector<2x8xf32>
    %32 = vector.multi_reduction <add>, %31, %cst_20 [1] : vector<2x8x8xf32> to vector<2x8xf32>
    %33 = vector.shape_cast %32 : vector<2x8xf32> to vector<2x1x8xf32>
    %34 = tpu.reciprocal %33 {approx = true} : vector<2x1x8xf32> -> vector<2x1x8xf32>
    %35 = vector.broadcast %34 : vector<2x1x8xf32> to vector<2x8x8xf32>
    %36 = arith.mulf %31, %35 : vector<2x8x8xf32>
    %37 = vector.shape_cast %36 : vector<2x8x8xf32> to vector<16x8xf32>
    %c0_21 = arith.constant 0 : index
    %c0_22 = arith.constant 0 : index
    %38 = vector.load %arg9[%c0_21, %c0_22] : memref<8x256xf32, #tpu.memory_space<vmem>>, vector<8x256xf32>
    %cst_23 = arith.constant dense<0.000000e+00> : vector<16x256xf32>
    %39 = tpu.matmul %37, %38, %cst_23 {dimension_numbers = #tpu.dot_dimension_numbers<[1], [0], [0], [1], [0, 0, 1, 1], [], []>} : vector<16x8xf32>, vector<8x256xf32>, vector<16x256xf32> -> vector<16x256xf32>
    %40 = arith.mulf %39, %11 : vector<16x256xf32>
    %41 = vector.shape_cast %40 : vector<16x256xf32> to vector<2x8x256xf32>
    %cst_24 = arith.constant dense<0.000000e+00> : vector<2x256xf32>
    %42 = vector.multi_reduction <add>, %41, %cst_24 [1] : vector<2x8x256xf32> to vector<2x256xf32>
    %c0_25 = arith.constant 0 : index
    %c0_26 = arith.constant 0 : index
    %43 = vector.load %arg10[%c0_25, %c0_26] : memref<256x32xf32, #tpu.memory_space<vmem>>, vector<256x32xf32>
    %cst_27 = arith.constant dense<0.000000e+00> : vector<2x32xf32>
    %44 = tpu.matmul %42, %43, %cst_27 {dimension_numbers = #tpu.dot_dimension_numbers<[1], [0], [0], [1], [0, 0, 1, 1], [], []>} : vector<2x256xf32>, vector<256x32xf32>, vector<2x32xf32> -> vector<2x32xf32>
    %c0_28 = arith.constant 0 : index
    %c0_29 = arith.constant 0 : index
    %45 = vector.load %arg11[%c0_28, %c0_29] : memref<1x32xf32, #tpu.memory_space<vmem>>, vector<1x32xf32>
    %46 = vector.broadcast %45 : vector<1x32xf32> to vector<2x32xf32>
    %47 = arith.addf %44, %46 : vector<2x32xf32>
    %c0_30 = arith.constant 0 : index
    %c0_31 = arith.constant 0 : index
    %48 = vector.load %arg12[%c0_30, %c0_31] : memref<2x32xf32, #tpu.memory_space<vmem>>, vector<2x32xf32>
    tpu.vector_store %arg12[%c0_30, %c0_31], %47 {strides = array<i32>} : memref<2x32xf32, #tpu.memory_space<vmem>>, vector<2x32xf32>,
    return
  }
  func.func @transform_0(%arg0: i32) -> (i32, i32, i32) {
    %c0_i32 = arith.constant 0 : i32
    %c0_i32_0 = arith.constant 0 : i32
    %c0_i32_1 = arith.constant 0 : i32
    return %arg0, %c0_i32, %c0_i32_0 : i32, i32, i32
  }
  func.func @transform_1(%arg0: i32) -> (i32, i32) {
    %c0_i32 = arith.constant 0 : i32
    %c0_i32_0 = arith.constant 0 : i32
    %c0_i32_1 = arith.constant 0 : i32
    return %c0_i32, %c0_i32_0 : i32, i32
  }
  func.func @transform_2(%arg0: i32) -> (i32, i32) {
    %c0_i32 = arith.constant 0 : i32
    %c0_i32_0 = arith.constant 0 : i32
    %c0_i32_1 = arith.constant 0 : i32
    return %c0_i32, %c0_i32_0 : i32, i32
  }
  func.func @transform_3(%arg0: i32) -> (i32, i32) {
    %c0_i32 = arith.constant 0 : i32
    %c0_i32_0 = arith.constant 0 : i32
    %c0_i32_1 = arith.constant 0 : i32
    return %c0_i32, %c0_i32_0 : i32, i32
  }
  func.func @transform_4(%arg0: i32) -> (i32, i32) {
    %c0_i32 = arith.constant 0 : i32
    %c0_i32_0 = arith.constant 0 : i32
    %c0_i32_1 = arith.constant 0 : i32
    return %c0_i32, %c0_i32_0 : i32, i32
  }
  func.func @transform_5(%arg0: i32) -> (i32, i32) {
    %c0_i32 = arith.constant 0 : i32
    %c0_i32_0 = arith.constant 0 : i32
    %c0_i32_1 = arith.constant 0 : i32
    return %c0_i32, %c0_i32_0 : i32, i32
  }
  func.func @transform_6(%arg0: i32) -> (i32, i32) {
    %c0_i32 = arith.constant 0 : i32
    %c0_i32_0 = arith.constant 0 : i32
    %c0_i32_1 = arith.constant 0 : i32
    return %c0_i32, %c0_i32_0 : i32, i32
  }
  func.func @transform_7(%arg0: i32) -> (i32, i32) {
    %c0_i32 = arith.constant 0 : i32
    %c0_i32_0 = arith.constant 0 : i32
    %c0_i32_1 = arith.constant 0 : i32
    return %c0_i32, %c0_i32_0 : i32, i32
  }
  func.func @transform_8(%arg0: i32) -> (i32, i32) {
    %c0_i32 = arith.constant 0 : i32
    %c0_i32_0 = arith.constant 0 : i32
    %c0_i32_1 = arith.constant 0 : i32
    return %c0_i32, %c0_i32_0 : i32, i32
  }
  func.func @transform_9(%arg0: i32) -> (i32, i32) {
    %c0_i32 = arith.constant 0 : i32
    %c0_i32_0 = arith.constant 0 : i32
    %c0_i32_1 = arith.constant 0 : i32
    return %c0_i32, %c0_i32_0 : i32, i32
  }
  func.func @transform_10(%arg0: i32) -> (i32, i32) {
    %c0_i32 = arith.constant 0 : i32
    %c0_i32_0 = arith.constant 0 : i32
    %c0_i32_1 = arith.constant 0 : i32
    return %c0_i32, %c0_i32_0 : i32, i32
  }
  func.func @transform_11(%arg0: i32) -> (i32, i32) {
    %c0_i32 = arith.constant 0 : i32
    %c0_i32_0 = arith.constant 0 : i32
    return %arg0, %c0_i32 : i32, i32
  }
}

</mosaic_0001>

<bundles_post_ra>
// kernel: tpu_custom_call.1
= control target key start
LH: loop header
LB: loop body
LE: loop exit
PB: predicated region body
PF: predicated region fallthrough
CT: control target
= control target key end

     0   :  { %v893_v4 = vmov 0.0   ;;  %vm61_vm0 = vcmask 261120   ;;  %vm263_vm1 = vcmask 1041409   ;;  %s1294_s0 = inlined_call_operand.vmem [shape: f32[2,8,32], index: 0, kind: input, shape index: {}]   ;;  %s1295_s1 = inlined_call_operand.vmem [shape: f32[32,256], index: 1, kind: input, shape index: {}]   ;;  %s1296_s2 = inlined_call_operand.vmem [shape: f32[1,256], index: 2, kind: input, shape index: {}]   ;;  %s1297_s3 = inlined_call_operand.vmem [shape: f32[32,256], index: 3, kind: input, shape index: {}]   ;;  %s1298_s4 = inlined_call_operand.vmem [shape: f32[1,256], index: 4, kind: input, shape index: {}]   ;;  %s1299_s5 = inlined_call_operand.vmem [shape: f32[32,256], index: 5, kind: input, shape index: {}]   ;;  %s1300_s6 = inlined_call_operand.vmem [shape: f32[1,256], index: 6, kind: input, shape index: {}]   ;;  %s1301_s7 = inlined_call_operand.vmem [shape: f32[256,8], index: 7, kind: input, shape index: {}]   ;;  %s1302_s8 = inlined_call_operand.vmem [shape: f32[8,256], index: 8, kind: input, shape index: {}]   ;;  %s1303_s9 = inlined_call_operand.vmem [shape: f32[256,32], index: 9, kind: input, shape index: {}]   ;;  %s1304_s10 = inlined_call_operand.vmem [shape: f32[1,32], index: 10, kind: input, shape index: {}]   ;;  %s1305_s11 = inlined_call_operand.hbm [shape: f32[2,32], index: 11, kind: output, shape index: {}]  }
   0x1   :  { %v48_v0 = vld [vmem:[%s1297_s3 + $0x38] sm:$0xff]  ;;  %v47_v1 = vld [vmem:[%s1297_s3 + $0x30] sm:$0xff]  ;;  %v46_v2 = vld [vmem:[%s1297_s3 + $0x28] sm:$0xff]  ;;  %132 = vmatprep.mubr.f32.mxu0 %v893_v4  ;;  %229 = vmatprep.mubr.f32.mxu1 %v893_v4 }
   0x2   :  { %92 = vmatprep.subr.mxu0 %v48_v0  ;;  %v45_v3 = vld [vmem:[%s1297_s3 + $0x20] sm:$0xff]  ;;  %v44_v5 = vld [vmem:[%s1297_s3 + $0x18] sm:$0xff]  ;;  %v43_v6 = vld [vmem:[%s1297_s3 + $0x10] sm:$0xff] }
   0x3   :  { %93 = vmatpush1.msra.mxu0 %v47_v1  ;;  %v42_v7 = vld [vmem:[%s1297_s3 + $0x8] sm:$0xff]  ;;  %v41_v8 = vld [vmem:[%s1297_s3] sm:$0xff]  ;;  %v249_v10 = vld [vmem:[%s1295_s1 + $0x38] sm:$0xff] }
   0x4   :  { %94 = vmatprep.subr.mxu0 %v46_v2  ;;  %v39_v9 = vld [vmem:[%s1294_s0] sm:$0xff]  ;;  %v152_v11 = vld [vmem:[%s1299_s5 + $0x38] sm:$0xff]  ;;  %v151_v12 = vld [vmem:[%s1299_s5 + $0x30] sm:$0xff] }
   0x5   :  { %95 = vmatpush1.msra.mxu0 %v45_v3  ;;  %v248_v13 = vld [vmem:[%s1295_s1 + $0x30] sm:$0xff]  ;;  %v40_v14 = vld [vmem:[%s1294_s0 + $0x8] sm:$0xff]  ;;  %189 = vmatprep.subr.mxu1 %v152_v11  ;;  %v246_v17 = vld [vmem:[%s1295_s1 + $0x20] sm:$0xff] }
   0x6   :  { %96 = vmatprep.subr.mxu0 %v44_v5  ;;  %v247_v15 = vld [vmem:[%s1295_s1 + $0x28] sm:$0xff]  ;;  %190 = vmatpush1.msra.mxu1 %v151_v12  ;;  %v149_v18 = vld [vmem:[%s1299_s5 + $0x20] sm:$0xff]  ;;  %v262_v19 = vrot.slane %v40_v14, 7  ;;  %v245_v20 = vld [vmem:[%s1295_s1 + $0x18] sm:$0xff] }
   0x7   :  { %97 = vmatpush1.msra.mxu0 %v43_v6  ;;  %v150_v16 = vld [vmem:[%s1299_s5 + $0x28] sm:$0xff]  ;;  %v244_v21 = vld [vmem:[%s1295_s1 + $0x10] sm:$0xff] }
   0x8   :  { %98 = vmatprep.subr.mxu0 %v42_v7  ;;  %191 = vmatprep.subr.mxu1 %v150_v16 }
   0x9   :  { %99 = vmatpush1.msra.mxu0 %v41_v8 }
   0xa   :  { %779 = vmatmul.mubr.msk.f32.vlgmr.msra.gmra.mxu0 %vm61_vm0, %v39_v9  ;;  %291 = vmatprep.subr.mxu0 %v249_v10 }
   0xb   :  { %292 = vmatpush1.msra.mxu0 %v248_v13  ;;  %138 = vmatprep.mubr.f32.mxu0 %v893_v4 }
   0xc   :  { %293 = vmatprep.subr.mxu0 %v247_v15 }
   0xd   :  { %16 = vsyncpa [#allocation3], 0  ;;  %294 = vmatpush1.msra.mxu0 %v246_v17  ;;  %v243_v22 = vld [vmem:[%s1295_s1 + $0x8] sm:$0xff]  ;;  %192 = vmatpush1.msra.mxu1 %v149_v18  ;;  %v148_v23 = vld [vmem:[%s1299_s5 + $0x18] sm:$0xff]  ;;  %v264_v26 = vsel %vm263_vm1, %v262_v19, %v39_v9  ;;  %v51_v61 = vlaneseq  ;;  %v894_v1 = vmov 1966171168  }
   0xe   :  { %780 = vmatmul.mubr.msk.f32.gmra.mxu0 %vm61_vm0, %v40_v14  ;;  %295 = vmatprep.subr.mxu0 %v245_v20  ;;  %v242_v24 = vld [vmem:[%s1295_s1] sm:$0xff]  ;;  %v147_v25 = vld [vmem:[%s1299_s5 + $0x10] sm:$0xff]  ;;  %v146_v27 = vld [vmem:[%s1299_s5 + $0x8] sm:$0xff]  ;;  %v342_v2 = vunpack.c.l.s4 %v894_v1  ;;  %vm494_vm2 = vcmask 64512   ;;  %s895_s17 = smov [#allocation2]   ;;  %vm763_vm3 = vcmask 254976  }
   0xf   :  { %296 = vmatpush1.msra.mxu0 %v244_v21  ;;  %331 = vmatprep.mubr.f32.mxu0 %v893_v4  ;;  %v145_v28 = vld [vmem:[%s1299_s5] sm:$0xff]  ;;  %v418_v29 = vld [vmem:[%s1301_s7 + $0xf8] sm:$0xff]  ;;  %v417_v31 = vld [vmem:[%s1301_s7 + $0xf0] sm:$0xff]  ;;  %v52_v63 = vshrl.u32 %v51_v61, 7  ;;  %s771_s18 = sshll.u32 %s895_s17, 4  ;;  %s772_s18 = int_to_ptr.vmem [resolvable:$true] %s771_s18 }
  0x10   :  { %297 = vmatprep.subr.mxu0 %v243_v22  ;;  %193 = vmatprep.subr.mxu1 %v148_v23  ;;  %v402_v30 = vld [vmem:[%s1301_s7 + $0x78] sm:$0xff]  ;;  %v401_v32 = vld [vmem:[%s1301_s7 + $0x70] sm:$0xff]  ;;  %v416_v33 = vld [vmem:[%s1301_s7 + $0xe8] sm:$0xff]  ;;  %v343_v11 = vunpack.c.0.s8 %v342_v2  ;;  %s871_s19 = scalar_lea.vmem %s772_s18, 32  ;;  %p876_p1 = scmp.lt.s32.totalorder %s772_s18, %s772_s18 }
  0x11   :  { %298 = vmatpush1.msra.mxu0 %v242_v24  ;;  %194 = vmatpush1.msra.mxu1 %v147_v25  ;;  %v400_v34 = vld [vmem:[%s1301_s7 + $0x68] sm:$0xff]  ;;  %v415_v35 = vld [vmem:[%s1301_s7 + $0xe0] sm:$0xff]  ;;  %v414_v37 = vld [vmem:[%s1301_s7 + $0xd8] sm:$0xff]  ;;  %v1145_v6 = vsub.s32 0, %v52_v63  ;;  %v1147_v7 = vsub.s32 1, %v52_v63  ;;  %p872_p0 = scmp.ne.s32.totalorder %s772_s18, %s871_s19  ;;  %p877_p2 = scmp.lt.s32.totalorder %s871_s19, %s871_s19 }
  0x12   :  { %783 = vmatmul.mubr.msk.f32.vlgmr.msra.gmra.mxu0 %vm61_vm0, %v264_v26  ;;  %195 = vmatprep.subr.mxu1 %v146_v27  ;;  %v399_v36 = vld [vmem:[%s1301_s7 + $0x60] sm:$0xff]  ;;  %v398_v38 = vld [vmem:[%s1301_s7 + $0x58] sm:$0xff]  ;;  %v413_v39 = vld [vmem:[%s1301_s7 + $0xd0] sm:$0xff]  ;;  %v346_v17 = vsub.s32 %v343_v11, %v52_v63 }
  0x13   :  { %196 = vmatpush1.msra.mxu1 %v145_v28  ;;  %605 = vmatprep.mubr.f32.mxu0 %v893_v4  ;;  %v397_v40 = vld [vmem:[%s1301_s7 + $0x50] sm:$0xff]  ;;  %v412_v41 = vld [vmem:[%s1301_s7 + $0xc8] sm:$0xff]  ;;  %v411_v43 = vld [vmem:[%s1301_s7 + $0xc0] sm:$0xff]  ;;  %p878_p3 = por %p877_p2, %p876_p1 }
  0x14   :  { %781 = vmatmul.mubr.msk.f32.vlgmr.msra.gmra.mxu1 %vm61_vm0, %v39_v9  ;;  %787 = vmatprep.subr.mxu1 %v418_v29  ;;  %v396_v42 = vld [vmem:[%s1301_s7 + $0x48] sm:$0xff]  ;;  %v395_v44 = vld [vmem:[%s1301_s7 + $0x40] sm:$0xff]  ;;  %v410_v45 = vld [vmem:[%s1301_s7 + $0xb8] sm:$0xff] }
  0x15   :  { %788 = vmatpush3.msra.mxu1 %v402_v30  ;;  %235 = vmatprep.mubr.f32.mxu1 %v893_v4  ;;  %v394_v46 = vld [vmem:[%s1301_s7 + $0x38] sm:$0xff]  ;;  %v409_v47 = vld [vmem:[%s1301_s7 + $0xb0] sm:$0xff]  ;;  %v408_v49 = vld [vmem:[%s1301_s7 + $0xa8] sm:$0xff]  ;;  %p879_p4 = pnand %p878_p3, %p872_p0 }
  0x16   :  { %789 = vmatprep.subr.mxu1 %v417_v31  ;;  %v393_v48 = vld [vmem:[%s1301_s7 + $0x30] sm:$0xff]  ;;  %v392_v50 = vld [vmem:[%s1301_s7 + $0x28] sm:$0xff]  ;;  %v407_v51 = vld [vmem:[%s1301_s7 + $0xa0] sm:$0xff] }
  0x17   :  { %790 = vmatpush3.msra.mxu1 %v401_v32  ;;  %v391_v52 = vld [vmem:[%s1301_s7 + $0x20] sm:$0xff]  ;;  %v406_v53 = vld [vmem:[%s1301_s7 + $0x98] sm:$0xff]  ;;  %v405_v55 = vld [vmem:[%s1301_s7 + $0x90] sm:$0xff] }
  0x18   :  { %791 = vmatprep.subr.mxu1 %v416_v33  ;;  %782 = vmatmul.mubr.msk.f32.gmra.mxu1 %vm61_vm0, %v40_v14  ;;  %v390_v54 = vld [vmem:[%s1301_s7 + $0x18] sm:$0xff]  ;;  %v389_v56 = vld [vmem:[%s1301_s7 + $0x10] sm:$0xff]  ;;  %v404_v57 = vld [vmem:[%s1301_s7 + $0x88] sm:$0xff] }
  0x19   :  { %792 = vmatpush3.msra.mxu1 %v400_v34  ;;  %v388_v58 = vld [vmem:[%s1301_s7 + $0x8] sm:$0xff]  ;;  %v403_v59 = vld [vmem:[%s1301_s7 + $0x80] sm:$0xff] }
  0x1a   :  { %793 = vmatprep.subr.mxu1 %v415_v35  ;;  %v387_v60 = vld [vmem:[%s1301_s7] sm:$0xff] }
  0x1b   :  { %794 = vmatpush3.msra.mxu1 %v399_v36  ;;  %v250_v5 = vld [vmem:[%s1296_s2] sm:$0x3] }
  0x1c   :  { %795 = vmatprep.subr.mxu1 %v414_v37  ;;  %v255_v9 = vrot.slane %v250_v5, %v1145_v6  ;;  %v259_v10 = vrot.slane %v250_v5, %v1147_v7  ;;  %v49_v14 = vld [vmem:[%s1298_s4] sm:$0x3]  ;;  %v534_v37 = vld [vmem:[%s1302_s8 + $0x8] sm:$0xff] }
  0x1d   :  { %796 = vmatpush3.msra.mxu1 %v398_v38  ;;  %v54_v19 = vrot.slane %v49_v14, %v1145_v6  ;;  %v58_v20 = vrot.slane %v49_v14, %v1147_v7  ;;  %v533_v38 = vld [vmem:[%s1302_s8] sm:$0xff]  ;;  %571 = vmatprep.subr.mxu0 %v534_v37  ;;  %v671_v37 = vld [vmem:[%s1303_s9 + $0xc8] sm:$0xff] }
  0x1e   :  { %797 = vmatprep.subr.mxu1 %v413_v39  ;;  %572 = vmatpush1.msra.mxu0 %v533_v38  ;;  %v677_v39 = vld [vmem:[%s1303_s9 + $0xf8] sm:$0xff]  ;;  %v655_v38 = vld [vmem:[%s1303_s9 + $0x48] sm:$0xff] }
  0x1f   :  { %798 = vmatpush3.msra.mxu1 %v397_v40  ;;  %825 = vmatprep.subr.mxu0 %v677_v39  ;;  %v670_v39 = vld [vmem:[%s1303_s9 + $0xc0] sm:$0xff] }
  0x20   :  { %799 = vmatprep.subr.mxu1 %v412_v41 }
  0x21   :  { %800 = vmatpush3.msra.mxu1 %v396_v42 }
  0x22   :  { %801 = vmatprep.subr.mxu1 %v411_v43 }
  0x23   :  { %802 = vmatpush3.msra.mxu1 %v395_v44 }
  0x24   :  { %803 = vmatprep.subr.mxu1 %v410_v45 }
  0x25   :  { %804 = vmatpush3.msra.mxu1 %v394_v46 }
  0x26   :  { %805 = vmatprep.subr.mxu1 %v409_v47 }
  0x27   :  { %806 = vmatpush3.msra.mxu1 %v393_v48 }
  0x28   :  { %807 = vmatprep.subr.mxu1 %v408_v49 }
  0x29   :  { %808 = vmatpush3.msra.mxu1 %v392_v50 }
  0x2a   :  { %809 = vmatprep.subr.mxu1 %v407_v51 }
  0x2b   :  { %810 = vmatpush3.msra.mxu1 %v391_v52 }
  0x2c   :  { %811 = vmatprep.subr.mxu1 %v406_v53 }
  0x2d   :  { %812 = vmatpush3.msra.mxu1 %v390_v54 }
  0x2e   :  { %813 = vmatprep.subr.mxu1 %v405_v55 }
  0x2f   :  { %814 = vmatpush3.msra.mxu1 %v389_v56 }
  0x30   :  { %815 = vmatprep.subr.mxu1 %v404_v57 }
  0x31   :  { %816 = vmatpush3.msra.mxu1 %v388_v58 }
  0x32   :  { %817 = vmatprep.subr.mxu1 %v403_v59 }
  0x33   :  { %818 = vmatpush3.msra.mxu1 %v387_v60 }
  0xca   :  { %v134_v62 = vpop.f32.mrf.mxu0 }
  0xcb   :  { %v135_v24 = vadd.f32 %v134_v62, %v54_v19 }
  0xcc   :  { %v136_v0 = vpop.f32.mrf.mxu0 }
  0xcd   :  { %v137_v25 = vadd.f32 %v136_v0, %v58_v20 }
  0xce   :  { %v140_v3 = vpop.f32.mrf.mxu0 }
  0xcf   :  { %v141_v35 = vadd.f32 %v140_v3, %v54_v19 }
  0xd0   :  { %v142_v8 = vpop.f32.mrf.mxu0 }
  0xd1   :  { %v143_v29 = vadd.f32 %v142_v8, %v58_v20 }
  0xd2   :  { %v333_v12 = vpop.f32.mrf.mxu0 }
  0xd3   :  { %v334_v15 = vadd.f32 %v333_v12, %v255_v9 }
  0xd4   :  { %v335_v13 = vpop.f32.mrf.mxu0  ;;  %v1169_v40 = vpop.f32.mrf.mxu1 }
  0xd5   :  { %v336_v16 = vadd.f32 %v335_v13, %v259_v10 }
  0xd6   :  { %v1171_v41 = vpop.f32.mrf.mxu1 }
  0xd7   :  { %v340_v18 = vcombine.low %v334_v15, %v336_v16 }
  0xd8   :  { %v1173_v42 = vpop.f32.mrf.mxu1 }
  0xd9   :  { %v347_v21 = vrot.slane %v340_v18, %v346_v17 }
  0xda   :  { %v1175_v43 = vpop.f32.mrf.mxu1 }
  0xdb   :  { %v348_v22 = vcombine.high %v347_v21, %v347_v21  ;;  %v355_v23 = vrot.slane %v347_v21, %v346_v17 }
  0xdd   :  { %v366_v26 = vrot.slane %v355_v23, %v1145_v6  ;;  %v370_v27 = vrot.slane %v355_v23, %v1147_v7  ;;  %v362_v28 = vrot.slane %v348_v22, %v346_v17 }
  0xdf   :  { %v383_v30 = vmul.f32 %v366_v26, %v135_v24  ;;  %v384_v31 = vmul.f32 %v370_v27, %v137_v25  ;;  %v378_v32 = vrot.slane %v362_v28, %v1147_v7  ;;  %v374_v33 = vrot.slane %v362_v28, %v1145_v6  ;;  %v661_v25 = vld [vmem:[%s1303_s9 + $0x78] sm:$0xff]  ;;  %v676_v26 = vld [vmem:[%s1303_s9 + $0xf0] sm:$0xff] }
  0xe0   :  { %v660_v27 = vld [vmem:[%s1303_s9 + $0x70] sm:$0xff] }
  0xe1   :  { %483 = vmatprep.mubr.f32.mxu1 %v384_v31  ;;  %v386_v34 = vmul.f32 %v378_v32, %v143_v29  ;;  %v385_v36 = vmul.f32 %v374_v33, %v141_v35  ;;  %v675_v29 = vld [vmem:[%s1303_s9 + $0xe8] sm:$0xff]  ;;  %v674_v32 = vld [vmem:[%s1303_s9 + $0xe0] sm:$0xff]  ;;  %v673_v33 = vld [vmem:[%s1303_s9 + $0xd8] sm:$0xff] }
  0xe2   :  { %484 = vmatmul.mubr.f32.vlgmr.msra.gmra.mxu1 %v383_v30  ;;  %v659_v31 = vld [vmem:[%s1303_s9 + $0x68] sm:$0xff]  ;;  %v672_v35 = vld [vmem:[%s1303_s9 + $0xd0] sm:$0xff] }
  0xe3   :  { %488 = vmatprep.mubr.f32.mxu1 %v386_v34  ;;  %v657_v34 = vld [vmem:[%s1303_s9 + $0x58] sm:$0xff] }
  0xe6   :  { %489 = vmatmul.mubr.f32.gmra.mxu1 %v385_v36  ;;  %v656_v36 = vld [vmem:[%s1303_s9 + $0x50] sm:$0xff] }
 0x1a2   :  { %v819_v44 = vpop.f32.mrf.mxu1 }
 0x1a4   :  { %v820_v45 = vpop.f32.mrf.mxu1 }
 0x1a5   :  { %v821_v46 = vadd.f32 %v820_v45, %v819_v44  ;;  %v654_v44 = vld [vmem:[%s1303_s9 + $0x40] sm:$0xff]  ;;  %v669_v45 = vld [vmem:[%s1303_s9 + $0xb8] sm:$0xff] }
 0x1a6   :  { %v822_v47 = vpop.f32.mrf.mxu1 }
 0x1a7   :  { %v495_v48 = vsel %vm494_vm2, %v821_v46, -inf }
 0x1a8   :  { %v496_v49 = vrot.slane %v495_v48, 4  ;;  %v823_v50 = vpop.f32.mrf.mxu1 }
 0x1a9   :  { %v824_v51 = vadd.f32 %v823_v50, %v822_v47  ;;  %v668_v47 = vld [vmem:[%s1303_s9 + $0xb0] sm:$0xff]  ;;  %v651_v50 = vld [vmem:[%s1303_s9 + $0x28] sm:$0xff] }
 0x1aa   :  { %v497_v52 = vmax.f32 %v495_v48, %v496_v49  ;;  %v652_v48 = vld [vmem:[%s1303_s9 + $0x30] sm:$0xff]  ;;  %v667_v49 = vld [vmem:[%s1303_s9 + $0xa8] sm:$0xff] }
 0x1ab   :  { %v502_v53 = vsel %vm494_vm2, %v824_v51, -inf }
 0x1ac   :  { %v498_v54 = vrot.slane %v497_v52, 2  ;;  %v503_v55 = vrot.slane %v502_v53, 4 }
 0x1ae   :  { %v499_v56 = vmax.f32 %v497_v52, %v498_v54  ;;  %v504_v57 = vmax.f32 %v502_v53, %v503_v55  ;;  %v650_v52 = vld [vmem:[%s1303_s9 + $0x20] sm:$0xff]  ;;  %v665_v53 = vld [vmem:[%s1303_s9 + $0x98] sm:$0xff]  ;;  %v664_v55 = vld [vmem:[%s1303_s9 + $0x90] sm:$0xff] }
 0x1af   :  { %v649_v54 = vld [vmem:[%s1303_s9 + $0x18] sm:$0xff] }
 0x1b0   :  { %v500_v58 = vrot.slane %v499_v56, 1  ;;  %v505_v59 = vrot.slane %v504_v57, 2 }
 0x1b2   :  { %v501_v60 = vmax.f32 %v499_v56, %v500_v58  ;;  %v506_v61 = vmax.f32 %v504_v57, %v505_v59  ;;  %v648_v56 = vld [vmem:[%s1303_s9 + $0x10] sm:$0xff]  ;;  %v663_v57 = vld [vmem:[%s1303_s9 + $0x88] sm:$0xff]  ;;  %v662_v59 = vld [vmem:[%s1303_s9 + $0x80] sm:$0xff] }
 0x1b3   :  { %v647_v58 = vld [vmem:[%s1303_s9 + $0x8] sm:$0xff] }
 0x1b4   :  { %v509_v62 = vsub.f32 %v821_v46, %v501_v60  ;;  %v507_v63 = vrot.slane %v506_v61, 1  ;;  %v653_v46 = vld [vmem:[%s1303_s9 + $0x38] sm:$0xff]  ;;  %v646_v60 = vld [vmem:[%s1303_s9] sm:$0xff] }
 0x1b6   :  { %v511_v0 = vmul.f32 1.442695, %v509_v62  ;;  %v508_v1 = vmax.f32 %v506_v61, %v507_v63  ;;  %v153_v61 = vld [vmem:[%s1300_s6] sm:$0x3] }
 0x1b7   :  { %v158_v62 = vrot.slane %v153_v61, %v1145_v6  ;;  %v162_v63 = vrot.slane %v153_v61, %v1147_v7 }
 0x1b8   :  { %863 = vpow2.f32 %v511_v0  ;;  %v510_v2 = vsub.f32 %v824_v51, %v508_v1  ;;  %v666_v51 = vld [vmem:[%s1303_s9 + $0xa0] sm:$0xff] }
 0x1b9   :  { %v232_v0 = vadd.f32 %v1169_v40, %v158_v62 }
 0x1ba   :  { %v513_v3 = vmul.f32 1.442695, %v510_v2  ;;  %v234_v2 = vadd.f32 %v1171_v41, %v162_v63 }
 0x1bc   :  { %865 = vpow2.f32 %v513_v3 }
 0x1c5   :  { %v864_v5 = vpop.eup %863 }
 0x1c6   :  { %v515_v8 = vsel %vm494_vm2, %v864_v5, 0.0 }
 0x1c7   :  { %v516_v9 = vrot.slane %v515_v8, 4 }
 0x1c9   :  { %v866_v10 = vpop.eup %865  ;;  %v517_v11 = vadd.f32 %v516_v9, %v515_v8  ;;  %v238_v8 = vadd.f32 %v1173_v42, %v158_v62 }
 0x1ca   :  { %v522_v12 = vsel %vm494_vm2, %v866_v10, 0.0 }
 0x1cb   :  { %v518_v13 = vrot.slane %v517_v11, 2  ;;  %v523_v14 = vrot.slane %v522_v12, 4 }
 0x1cd   :  { %v519_v15 = vadd.f32 %v518_v13, %v517_v11  ;;  %v524_v16 = vadd.f32 %v523_v14, %v522_v12  ;;  %v240_v12 = vadd.f32 %v1175_v43, %v162_v63 }
 0x1cf   :  { %v520_v17 = vrot.slane %v519_v15, 1  ;;  %v525_v18 = vrot.slane %v524_v16, 2 }
 0x1d1   :  { %v521_v19 = vadd.f32 %v520_v17, %v519_v15  ;;  %v526_v20 = vadd.f32 %v525_v18, %v524_v16 }
 0x1d3   :  { %867 = vrcp.f32 %v521_v19  ;;  %v527_v21 = vrot.slane %v526_v20, 1 }
 0x1d5   :  { %v528_v22 = vadd.f32 %v527_v21, %v526_v20 }
 0x1d7   :  { %869 = vrcp.f32 %v528_v22 }
 0x1e0   :  { %v868_v23 = vpop.eup %867 }
 0x1e1   :  { %v531_v24 = vmul.f32 %v868_v23, %v864_v5 }
 0x1e3   :  { %784 = vmatmul.mubr.msk.f32.vlgmr.msra.gmra.mxu0 %vm494_vm2, %v531_v24 }
 0x1e4   :  { %v870_v28 = vpop.eup %869  ;;  %611 = vmatprep.mubr.f32.mxu0 %v893_v4  ;;  %826 = vmatpush3.msra.mxu0 %v661_v25  ;;  %v658_v4 = vld [vmem:[%s1303_s9 + $0x60] sm:$0xff] }
 0x1e5   :  { %v532_v30 = vmul.f32 %v870_v28, %v866_v10  ;;  %827 = vmatprep.subr.mxu0 %v676_v26 }
 0x1e6   :  { %828 = vmatpush3.msra.mxu0 %v660_v27 }
 0x1e7   :  { %785 = vmatmul.mubr.msk.f32.gmra.mxu0 %vm494_vm2, %v532_v30  ;;  %829 = vmatprep.subr.mxu0 %v675_v29 }
 0x1e8   :  { %830 = vmatpush3.msra.mxu0 %v659_v31 }
 0x1e9   :  { %831 = vmatprep.subr.mxu0 %v674_v32 }
 0x1ea   :  { %832 = vmatpush3.msra.mxu0 %v658_v4 }
 0x1eb   :  { %833 = vmatprep.subr.mxu0 %v673_v33 }
 0x1ec   :  { %834 = vmatpush3.msra.mxu0 %v657_v34 }
 0x1ed   :  { %835 = vmatprep.subr.mxu0 %v672_v35  ;;  %v786_v35 = vld [vmem:[%s1304_s10] ss:$0 sm:$0xff] }
 0x1ee   :  { %836 = vmatpush3.msra.mxu0 %v656_v36 }
 0x1ef   :  { %837 = vmatprep.subr.mxu0 %v671_v37 }
 0x1f0   :  { %838 = vmatpush3.msra.mxu0 %v655_v38 }
 0x1f1   :  { %839 = vmatprep.subr.mxu0 %v670_v39 }
 0x1f2   :  { %840 = vmatpush3.msra.mxu0 %v654_v44 }
 0x1f3   :  { %841 = vmatprep.subr.mxu0 %v669_v45 }
 0x1f4   :  { %842 = vmatpush3.msra.mxu0 %v653_v46 }
 0x1f5   :  { %843 = vmatprep.subr.mxu0 %v668_v47 }
 0x1f6   :  { %844 = vmatpush3.msra.mxu0 %v652_v48 }
 0x1f7   :  { %845 = vmatprep.subr.mxu0 %v667_v49 }
 0x1f8   :  { %846 = vmatpush3.msra.mxu0 %v651_v50 }
 0x1f9   :  { %847 = vmatprep.subr.mxu0 %v666_v51 }
 0x1fa   :  { %848 = vmatpush3.msra.mxu0 %v650_v52 }
 0x1fb   :  { %849 = vmatprep.subr.mxu0 %v665_v53 }
 0x1fc   :  { %850 = vmatpush3.msra.mxu0 %v649_v54 }
 0x1fd   :  { %851 = vmatprep.subr.mxu0 %v664_v55 }
 0x1fe   :  { %852 = vmatpush3.msra.mxu0 %v648_v56 }
 0x1ff   :  { %853 = vmatprep.subr.mxu0 %v663_v57 }
 0x200   :  { %854 = vmatpush3.msra.mxu0 %v647_v58 }
 0x201   :  { %855 = vmatprep.subr.mxu0 %v662_v59 }
 0x202   :  { %856 = vmatpush3.msra.mxu0 %v646_v60 }
 0x2a3   :  { %v607_v1 = vpop.f32.mrf.mxu0 }
 0x2a4   :  { %v618_v3 = vmul.f32 %v607_v1, %v232_v0 }
 0x2a5   :  { %v609_v5 = vpop.f32.mrf.mxu0 }
 0x2a6   :  { %v622_v9 = vrot.slane %v618_v3, 4  ;;  %v619_v10 = vmul.f32 %v609_v5, %v234_v2 }
 0x2a7   :  { %v613_v11 = vpop.f32.mrf.mxu0 }
 0x2a8   :  { %v623_v13 = vadd.f32 %v622_v9, %v618_v3  ;;  %v628_v14 = vrot.slane %v619_v10, 4  ;;  %v620_v15 = vmul.f32 %v613_v11, %v238_v8 }
 0x2a9   :  { %v615_v6 = vpop.f32.mrf.mxu0 }
 0x2aa   :  { %v624_v16 = vrot.slane %v623_v13, 2  ;;  %v629_v7 = vadd.f32 %v628_v14, %v619_v10  ;;  %v634_v17 = vrot.slane %v620_v15, 4  ;;  %v621_v40 = vmul.f32 %v615_v6, %v240_v12 }
 0x2ac   :  { %v625_v18 = vadd.f32 %v624_v16, %v623_v13  ;;  %v630_v19 = vrot.slane %v629_v7, 2  ;;  %v635_v41 = vadd.f32 %v634_v17, %v620_v15  ;;  %v640_v20 = vrot.slane %v621_v40, 4 }
 0x2ae   :  { %v631_v21 = vadd.f32 %v630_v19, %v629_v7  ;;  %v636_v22 = vrot.slane %v635_v41, 2  ;;  %v641_v42 = vadd.f32 %v640_v20, %v621_v40  ;;  %v626_v23 = vrot.slane %v625_v18, 1 }
 0x2b0   :  { %v637_v24 = vadd.f32 %v636_v22, %v635_v41  ;;  %v642_v25 = vrot.slane %v641_v42, 2  ;;  %v632_v26 = vrot.slane %v631_v21, 1  ;;  %v627_v28 = vadd.f32 %v626_v23, %v625_v18 }
 0x2b2   :  { %v638_v43 = vrot.slane %v637_v24, 1  ;;  %v643_v27 = vadd.f32 %v642_v25, %v641_v42  ;;  %v633_v31 = vadd.f32 %v632_v26, %v631_v21 }
 0x2b4   :  { %v639_v29 = vadd.f32 %v638_v43, %v637_v24  ;;  %v644_v30 = vrot.slane %v643_v27, 1 }
 0x2b6   :  { %v645_v32 = vadd.f32 %v644_v30, %v643_v27  ;;  %v689_v4 = vsel %vm263_vm1, %v639_v29, %v627_v28 }
 0x2b8   :  { %v690_v33 = vsel %vm263_vm1, %v645_v32, %v633_v31 }
 0x2b9   :  { %757 = vmatprep.mubr.f32.mxu0 %v690_v33 }
 0x2ba   :  { %758 = vmatmul.mubr.f32.vlgmr.msra.gmra.mxu0 %v689_v4 }
 0x37a   :  { %v857_v34 = vpop.f32.mrf.mxu0 }
 0x37c   :  { %v858_v36 = vpop.f32.mrf.mxu0 }
 0x37d   :  { %v859_v37 = vadd.f32 %v858_v36, %v857_v34 }
 0x37f   :  { %v760_v38 = vadd.f32 %v859_v37, %v786_v35 }
 0x381   :  { %764 = vst.msk [vmem:[#allocation2] sm:$0x3] %vm763_vm3, %v760_v38 }
 0x382   :  { %882 = shalt.err (!%p879_p4)
}
 0x383   :  { %774 = dma.vmem_to_hbm [thread:$0]  %s772_s18, 32, %s1305_s11, [#allocation3]  }
 0x384   :  { %891 = dma.done.wait [#allocation3], 32  }
 0x385   :  { %892 = vsyncadd [#allocation3], 4294967264 }
 0x386   :  { %778 = vsyncpa [#allocation3], 1 }

</bundles_post_ra>
